<compile_context>
chip_gen: v7x
topology: tpu7x:2x2x1
jax: 0.10.0
libtpu: 0.0.40
codegen_flags: <defaults>
</compile_context>

<pallas_src>
import jax
import jax.numpy as jnp
from jax.experimental import pallas as pl
from jax.experimental.pallas import tpu as pltpu


def _round_up(x: int, m: int) -> int:
    return ((x + m - 1) // m) * m


def _make_argmin_kernel(tile_d: int):
    def kernel(x_ref, o_ref, minval_ref, minidx_ref):
        k = pl.program_id(1)

        @pl.when(k == 0)
        def _init():
            if jnp.issubdtype(minval_ref.dtype, jnp.floating):
                big = jnp.inf
            else:
                big = jnp.iinfo(minval_ref.dtype).max
            minval_ref[...] = jnp.full_like(minval_ref, big)
            minidx_ref[...] = jnp.zeros_like(minidx_ref)

        x = x_ref[...]                                   # (TB, TD) native dtype
        tb, td = x.shape

        # Per-tile lane reduce: tile min and first-occurrence tile argmin.
        tile_min = jnp.min(x, axis=-1, keepdims=True)                      # (TB, 1)
        col = jax.lax.broadcasted_iota(jnp.int32, (tb, td), dimension=1)
        tile_idx = jnp.min(
            jnp.where(x == tile_min, col, jnp.int32(td)),
            axis=-1, keepdims=True)                                        # (TB, 1)

        # Strict-less: earlier D tiles win ties (matches torch first-occurrence).
        better = tile_min < minval_ref[...]
        minval_ref[...] = jnp.where(better, tile_min, minval_ref[...])
        minidx_ref[...] = jnp.where(better, tile_idx + k * td, minidx_ref[...])

        @pl.when(k == pl.num_programs(1) - 1)
        def _finalize():
            o_ref[...] = minidx_ref[...]

    return kernel


def selection_layer(x: jax.Array, *, tile_b: int = 256, tile_d: int = 2048) -> jax.Array:
    """Pallas equivalent of SelectionLayer.forward: argmin along dim=1 -> (B,) int32."""
    assert x.ndim == 2, "SelectionLayer expects a 2-D input (batch, inDim)"
    B, D = x.shape

    # Clamp tiles to (8, 128)-aligned padded dims.
    tb = min(tile_b, _round_up(B, 8))
    td = min(tile_d, _round_up(D, 128))
    B_pad = _round_up(B, tb)
    D_pad = _round_up(D, td)

    if (B_pad, D_pad) != (B, D):
        if jnp.issubdtype(x.dtype, jnp.floating):
            pad_val = float("inf")
        else:
            pad_val = int(jnp.iinfo(x.dtype).max)
        # D padding can never win the argmin; padded batch rows are sliced off.
        x = jnp.pad(x, ((0, B_pad - B), (0, D_pad - D)), constant_values=pad_val)

    grid = (B_pad // tb, D_pad // td)

    out = pl.pallas_call(
        _make_argmin_kernel(td),
        out_shape=jax.ShapeDtypeStruct((B_pad, 1), jnp.int32),
        grid_spec=pltpu.PrefetchScalarGridSpec(
            num_scalar_prefetch=0,
            grid=grid,
            in_specs=[pl.BlockSpec((tb, td), lambda i, k: (i, k))],
            out_specs=pl.BlockSpec((tb, 1), lambda i, k: (i, 0)),
            scratch_shapes=[
                pltpu.VMEM((tb, 1), x.dtype),    # running row min value
                pltpu.VMEM((tb, 1), jnp.int32),  # running row argmin index
            ],
        ),
        compiler_params=pltpu.CompilerParams(
            dimension_semantics=("parallel", "arbitrary"),
        ),
    )(x)
    return out[:B, 0]


if __name__ == "__main__":
    key = jax.random.PRNGKey(0)
    B, IN_DIM = 16, 256  # SelectionLayer(inDim=256), batch of 16 rows
    x = jax.random.normal(key, (B, IN_DIM), dtype=jnp.float32)
    # Plant a cross-tile tie in row 0 to exercise first-occurrence tie-breaking.
    x = x.at[0, 10].set(-100.0).at[0, 200].set(-100.0)

    # Small tiles so the demo actually runs a (2 batch-tiles x 2 D-tiles) grid
    # and the cross-tile running-argmin accumulator.
    idx = selection_layer(x, tile_b=8, tile_d=128)
    jax.block_until_ready(idx)

    ref = jnp.argmin(x, axis=1).astype(jnp.int32)
    assert idx.shape == (B,)
    assert idx.dtype == jnp.int32
    assert bool(jnp.all(idx == ref)), (idx, ref)

    # Also exercise native-dtype (bf16) compares and the padded / non-divisible path.
    x2 = jax.random.normal(jax.random.PRNGKey(1), (10, 200), dtype=jnp.bfloat16)
    idx2 = selection_layer(x2, tile_b=8, tile_d=128)
    jax.block_until_ready(idx2)
    ref2 = jnp.argmin(x2, axis=1).astype(jnp.int32)
    assert idx2.shape == (10,)
    assert bool(jnp.all(idx2 == ref2)), (idx2, ref2)

    print("KERNEL_OK")
</pallas_src>

<mosaic_0001>
module attributes {stable_mosaic.version = 11 : i64} {
  func.func @kernel(%arg0: i32, %arg1: i32, %arg2: memref<8x128xf32, #tpu.memory_space<vmem>>, %arg3: memref<8x1xi32, #tpu.memory_space<vmem>>, %arg4: memref<8x1xf32, #tpu.memory_space<vmem>>, %arg5: memref<8x1xi32, #tpu.memory_space<vmem>>) attributes {dimension_semantics = [#tpu.dimension_semantics<parallel>, #tpu.dimension_semantics<arbitrary>], iteration_bounds = array<i64: 2, 2>, scalar_prefetch = 0 : i64, scratch_operands = 2 : i64, tpu.core_type = #tpu.core_type<tc>, window_params = [{transform_indices = @transform_0, window_bounds = array<i64: 8, 128>}, {transform_indices = @transform_1, window_bounds = array<i64: 8, 1>}]} {
    %c0_i32 = arith.constant 0 : i32
    %0 = arith.cmpi eq, %arg1, %c0_i32 : i32
    %1 = arith.extui %0 : i1 to i32
    %c0_i32_0 = arith.constant 0 : i32
    %2 = arith.cmpi ne, %1, %c0_i32_0 : i32
    scf.if %2 {
      %cst_15 = arith.constant 0x7F800000 : f32
      %27 = vector.broadcast %cst_15 : f32 to vector<8x1xf32>
      %c0_16 = arith.constant 0 : index
      %c0_17 = arith.constant 0 : index
      %28 = vector.load %arg4[%c0_16, %c0_17] : memref<8x1xf32, #tpu.memory_space<vmem>>, vector<8x1xf32>
      tpu.vector_store %arg4[%c0_16, %c0_17], %27 {strides = array<i32>} : memref<8x1xf32, #tpu.memory_space<vmem>>, vector<8x1xf32>,
      %c0_i32_18 = arith.constant 0 : i32
      %29 = vector.broadcast %c0_i32_18 : i32 to vector<8x1xi32>
      %c0_19 = arith.constant 0 : index
      %c0_20 = arith.constant 0 : index
      %30 = vector.load %arg5[%c0_19, %c0_20] : memref<8x1xi32, #tpu.memory_space<vmem>>, vector<8x1xi32>
      tpu.vector_store %arg5[%c0_19, %c0_20], %29 {strides = array<i32>} : memref<8x1xi32, #tpu.memory_space<vmem>>, vector<8x1xi32>,
    } else {
    }
    %c0 = arith.constant 0 : index
    %c0_1 = arith.constant 0 : index
    %3 = vector.load %arg2[%c0, %c0_1] : memref<8x128xf32, #tpu.memory_space<vmem>>, vector<8x128xf32>
    %cst = arith.constant dense<0x7F800000> : vector<8xf32>
    %4 = vector.multi_reduction <minimumf>, %3, %cst [1] : vector<8x128xf32> to vector<8xf32>
    %5 = vector.shape_cast %4 : vector<8xf32> to vector<8x1xf32>
    %6 = tpu.iota {dimensions = array<i32: 1>} : vector<8x128xi32>
    %7 = vector.broadcast %5 : vector<8x1xf32> to vector<8x128xf32>
    %8 = arith.cmpf oeq, %3, %7 : vector<8x128xf32>
    %c128_i32 = arith.constant 128 : i32
    %9 = vector.broadcast %c128_i32 : i32 to vector<8x128xi32>
    %10 = arith.select %8, %6, %9 : vector<8x128xi1>, vector<8x128xi32>
    %cst_2 = arith.constant dense<2147483647> : vector<8xi32>
    %11 = vector.multi_reduction <minsi>, %10, %cst_2 [1] : vector<8x128xi32> to vector<8xi32>
    %12 = vector.shape_cast %11 : vector<8xi32> to vector<8x1xi32>
    %c0_3 = arith.constant 0 : index
    %c0_4 = arith.constant 0 : index
    %13 = vector.load %arg4[%c0_3, %c0_4] : memref<8x1xf32, #tpu.memory_space<vmem>>, vector<8x1xf32>
    %14 = arith.cmpf olt, %5, %13 : vector<8x1xf32>
    %c0_5 = arith.constant 0 : index
    %c0_6 = arith.constant 0 : index
    %15 = vector.load %arg4[%c0_5, %c0_6] : memref<8x1xf32, #tpu.memory_space<vmem>>, vector<8x1xf32>
    %16 = arith.select %14, %5, %15 : vector<8x1xi1>, vector<8x1xf32>
    %c0_7 = arith.constant 0 : index
    %c0_8 = arith.constant 0 : index
    %17 = vector.load %arg4[%c0_7, %c0_8] : memref<8x1xf32, #tpu.memory_space<vmem>>, vector<8x1xf32>
    tpu.vector_store %arg4[%c0_7, %c0_8], %16 {strides = array<i32>} : memref<8x1xf32, #tpu.memory_space<vmem>>, vector<8x1xf32>,
    %c128_i32_9 = arith.constant 128 : i32
    %18 = arith.muli %arg1, %c128_i32_9 : i32
    %19 = vector.broadcast %18 : i32 to vector<8x1xi32>
    %20 = arith.addi %12, %19 : vector<8x1xi32>
    %c0_10 = arith.constant 0 : index
    %c0_11 = arith.constant 0 : index
    %21 = vector.load %arg5[%c0_10, %c0_11] : memref<8x1xi32, #tpu.memory_space<vmem>>, vector<8x1xi32>
    %22 = arith.select %14, %20, %21 : vector<8x1xi1>, vector<8x1xi32>
    %c0_12 = arith.constant 0 : index
    %c0_13 = arith.constant 0 : index
    %23 = vector.load %arg5[%c0_12, %c0_13] : memref<8x1xi32, #tpu.memory_space<vmem>>, vector<8x1xi32>
    tpu.vector_store %arg5[%c0_12, %c0_13], %22 {strides = array<i32>} : memref<8x1xi32, #tpu.memory_space<vmem>>, vector<8x1xi32>,
    %c1_i32 = arith.constant 1 : i32
    %24 = arith.cmpi eq, %arg1, %c1_i32 : i32
    %25 = arith.extui %24 : i1 to i32
    %c0_i32_14 = arith.constant 0 : i32
    %26 = arith.cmpi ne, %25, %c0_i32_14 : i32
    scf.if %26 {
      %c0_15 = arith.constant 0 : index
      %c0_16 = arith.constant 0 : index
      %27 = vector.load %arg5[%c0_15, %c0_16] : memref<8x1xi32, #tpu.memory_space<vmem>>, vector<8x1xi32>
      %c0_17 = arith.constant 0 : index
      %c0_18 = arith.constant 0 : index
      %28 = vector.load %arg3[%c0_17, %c0_18] : memref<8x1xi32, #tpu.memory_space<vmem>>, vector<8x1xi32>
      tpu.vector_store %arg3[%c0_17, %c0_18], %27 {strides = array<i32>} : memref<8x1xi32, #tpu.memory_space<vmem>>, vector<8x1xi32>,
    } else {
    }
    return
  }
  func.func @transform_0(%arg0: i32, %arg1: i32) -> (i32, i32) {
    %c0_i32 = arith.constant 0 : i32
    return %arg0, %arg1 : i32, i32
  }
  func.func @transform_1(%arg0: i32, %arg1: i32) -> (i32, i32) {
    %c0_i32 = arith.constant 0 : i32
    %c0_i32_0 = arith.constant 0 : i32
    return %arg0, %c0_i32 : i32, i32
  }
}

</mosaic_0001>

<bundles_post_ra>
// kernel: tpu_custom_call.1
= control target key start
LH: loop header
LB: loop body
LE: loop exit
PB: predicated region body
PF: predicated region fallthrough
CT: control target
= control target key end

     0   :  { %6 = vsyncpa [#allocation5], 0  ;;  %s631_s0 = inlined_call_operand.hbm [shape: f32[16,256], index: 0, kind: input, shape index: {}]   ;;  %s632_s1 = inlined_call_operand.vmem [shape: s32[16,1], index: 1, kind: output, shape index: {}]  }
   0x1   :  { %8 = vsyncpa [#allocation5 + $0x1], 0  ;;  %s470_s6 = smov 0   ;;  %s472_s7 = smov 0  }
   0x2   :  { %s474_s8 = smov 0   ;;  %s476_s9 = smov 0  }
   0x3   :  { %s478_s10 = smov 0   ;;  %s480_s11 = smov 0  }
   0x4   :  { %s482_s12 = smov 0   ;;  %s484_s13 = smov 0  }
   0x5 LB: > { %s271_s14 = sadd.s32 4294967295, %s455_s13   ;;  %s23_s15 = sadd.s32 1, %s447_s11  ;;  %s455_s13 = sphi %s484_s13, %s14_s13   ;;  %s451_s12 = sphi %s482_s12, %s644_s12   ;;  %s447_s11 = sphi %s480_s11, %s643_s11   ;;  %s443_s10 = sphi %s478_s10, %s642_s10   ;;  %s439_s9 = sphi %s476_s9, %s641_s9   ;;  %s435_s8 = sphi %s474_s8, %s640_s8   ;;  %s431_s7 = sphi %s472_s7, %s639_s7   ;;  %s427_s6 = sphi %s470_s6, %s638_s6  }
   0x6   : > { %p24_p0 = scmp.ge.s32.totalorder %s23_s15, 2  ;;  %s26_s16 = sadd.s32 1, %s451_s12 }
   0x7   : > { %s35_s17 = sadd.s32 1, %s435_s8  ;;  %p42_p1 = scmp.ne.s32.totalorder %s435_s8, %s431_s7 }
   0x8   : > { %s646_s15 = smov (%p24_p0, %s23_s15), 0  ;;  %s648_s16 = smov (!%p24_p0, %s26_s16), %s451_s12 }
   0x9   : > { %s31_s18 = ssub.s32 %s447_s11, %s646_s15  ;;  %p43_p2 = scmp.eq.s32.totalorder %s455_s13, 0 }
   0xa   : > { %p28_p3 = scmp.ge.s32.totalorder %s648_s16, 2  ;;  %p48_p4 = scmp.ne.s32.totalorder %s431_s7, %s427_s6 }
   0xb   : > { %p521_p5 = por %p43_p2, %p42_p1  ;;  %p49_p6 = scmp.eq.s32.totalorder %s271_s14, 0 }
   0xc   : > { %s650_s16 = smov (%p28_p3, %s648_s16), 0  ;;  %p292_p8 = scmp.lt.s32.totalorder %s455_s13, 4 }
   0xd   : > { %p527_p7 = por %p49_p6, %p48_p4  ;;  %s30_s21 = ssub.s32 %s451_s12, %s650_s16 }
   0xe   : > { %s32_s22 = sor.u32 %s31_s18, %s30_s21  ;;  %s98_s23 = sand.u32 1, %s435_s8  }
   0xf   : > { %p33_p9 = scmp.eq.s32.totalorder %s32_s22, 0  ;;  %s275_s24 = sshll.u32 %s98_s23, 3 }
  0x10   : > { %s276_s25 = sshll.u32 %s451_s12, 1  ;;  %s102_s29 = scalar_lea.vmem [#allocation4], %s275_s24 }
  0x11   : > { %s537_s26 = scalar_select %p33_p9, %s435_s8, %s35_s17  }
  0x12   : > { %s107_s27 = sadd.s32 %s447_s11, %s276_s25  ;;  %s111_s30 = sshll.u32 %s102_s29, 4  ;;  %s545_s30 = int_to_ptr.vmem [resolvable:$true] %s111_s30 }
  0x13   : > { %s277_s28 = sshll.u32 %s107_s27, 7  ;;  %p551_p10 = pnand %p292_p8, %p521_p5 }
  0x14   : > { %s543_s4 = scalar_lea.hbm %s631_s0, %s277_s28  ;;  %s99_s6 = scalar_lea.sflag [#allocation5], %s98_s23 }
  0x15   : > { %s359_s14 = scalar_lea.hbm %s543_s4, 128  ;;  %p361_p0 = pneg %p551_p10 }
  0x16   : > { %p360_p13 = scmp.ne.s32.totalorder %s543_s4, %s359_s14  ;;  %s364_s19 = scalar_lea.hbm %s631_s0, 512 }
  0x17   : > { %p365_p3 = scmp.lt.u32.totalorder %s543_s4, %s631_s0  ;;  %p366_p4 = scmp.lt.u32.totalorder %s364_s19, %s359_s14 }
  0x18   : > { %p362_p1 = pnand %p361_p0, %p360_p13  ;;  %p368_p6 = scmp.lt.u32.totalorder %s359_s14, %s543_s4 }
  0x19   : > { %p367_p5 = por %p366_p4, %p365_p3 }
  0x1a   : > { %p363_p2 = pneg %p362_p1 }
  0x1b   : > { %p369_p8 = por %p368_p6, %p367_p5 }
  0x1d   : > { %p370_p9 = pnand %p369_p8, %p363_p2 }
  0x1f   : > { %373 = shalt.err (!%p370_p9)
}
  0x20   : > { %s374_s23 = scalar_lea.vmem %s545_s30, 128  ;;  %s457_s24 = smov [#allocation4]  }
  0x21   : > { %p375_p13 = scmp.ne.s32.totalorder %s545_s30, %s374_s23  ;;  %s379_s25 = sshll.u32 %s457_s24, 4  ;;  %s380_s25 = int_to_ptr.vmem [resolvable:$false] %s379_s25 }
  0x22   : > { %s381_s27 = scalar_lea.vmem %s380_s25, 256  ;;  %p382_p12 = scmp.lt.s32.totalorder %s545_s30, %s380_s25 }
  0x23   : > { %p377_p1 = pnand %p375_p13, %p361_p0  ;;  %p383_p3 = scmp.lt.s32.totalorder %s381_s27, %s374_s23 }
  0x25   : > { %p378_p11 = pneg %p377_p1  ;;  %p384_p4 = por %p383_p3, %p382_p12 }
  0x27   : > { %p385_p5 = pnand %p384_p4, %p378_p11 }
  0x29   : > { %388 = shalt.err (!%p385_p5)
}
  0x2a   : > { %291 = dma.hbm_to_vmem [thread:$0]  (!%p551_p10), %s543_s4, 128, %s545_s30, %s99_s6  }
  0x2b   : > { %p636_p2 = scmp.lt.s32.totalorder %s455_s13, 5  ;;  %p637_p6 = scmp.ge.s32.totalorder %s455_s13, 1 }
  0x2d   : > { %p117_p0 = pnand %p637_p6, %p636_p2 }
  0x2e   : > { %s122_s28 = sand.u32 (!%p117_p0), 1, %s431_s7  }
  0x2f   : > { %120 = sbr.rel (%p117_p0) target bundleno = 515 (0x203), region = 24  ;;  %s279_s29 = sshll.u32 (!%p117_p0), %s122_s28, 3 }
  0x30   : > { %s123_s2 = scalar_lea.sflag (!%p117_p0), [#allocation5], %s122_s28  ;;  %s126_s3 = scalar_lea.vmem (!%p117_p0), [#allocation4], %s279_s29 }
  0x36   : > { %422 = dma.done.wait (%p527_p7), %s123_s2, 128  }
  0x37   : > { %424 = vsyncadd (%p527_p7), %s123_s2, 4294967168  ;;  %p144_p11 = scmp.lt.s32.totalorder %s443_s10, 1  ;;  %p281_p10 = scmp.ne.s32.totalorder %s439_s9, 0 }
  0x38   : > { %vm152_vm0 = vcmask (!%p281_p10), 7168   ;;  %v458_v0 = vmov (!%p281_p10), inf   ;;  %v459_v1 = vmov (!%p281_p10), 0  }
  0x39   : > { %s652_s10 = smov (!%p144_p11, %s443_s10), 1  ;;  %151 = sbr.rel (%p281_p10) target bundleno = 64 (0x40), region = 32 }
  0x3a   : > { %s280_s30 = sshll.u32 %s652_s10, 3  ;;  %153 = vst.msk [vmem:[#allocation2] sm:$0xff] (!%p281_p10), %vm152_vm0, %v458_v0  ;;  %154 = vst.msk [vmem:[#allocation3] sm:$0xff] (!%p281_p10), %vm152_vm0, %v459_v1 }
  0x3b   : > { %s596_s6 = scalar_lea.vmem %s632_s1, %s280_s30 }
  0x40 PF: > { %v155_v2 = vld [vmem:[%s126_s3] sm:$0xff]  ;;  %v158_v3 = vlaneseq  ;;  %vm179_vm1 = vcmask 7168   ;;  %s282_s10 = sshll.u32 %s439_s9, 7  ;;  %p283_p7 = scmp.ne.s32.totalorder %s439_s9, 1 }
  0x41   : > { %156 = vmin.xlane.f32.xlu0 %v155_v2  ;;  %v176_v4 = vld [vmem:[#allocation2] sm:$0xff]  ;;  %v182_v19 = vstv %s282_s10  ;;  %v184_v21 = vld [vmem:[#allocation3] sm:$0xff] }
  0x42   : > { %v159_v5 = vand.u32 127, %v158_v3 }
  0xce   : > { %v157_v6 = vpop.xlane.xlu0 %156 }
  0xcf   : > { %vm160_vm2 = vcmp.eq.f32.partialorder %v155_v2, %v157_v6  ;;  %vm177_vm3 = vcmp.lt.f32.partialorder %v157_v6, %v176_v4 }
  0xd0   : > { %v178_v7 = vsel %vm177_vm3, %v157_v6, %v176_v4  ;;  %v161_v8 = vsel %vm160_vm2, %v159_v5, 128 }
  0xd1   : > { %180 = vst.msk [vmem:[#allocation2] sm:$0xff] %vm179_vm1, %v178_v7  ;;  %v163_v9 = vshra.s32 %v161_v8, 16  ;;  %v162_v11 = vand.u32 65535, %v161_v8 }
  0xd3   : > { %v165_v10 = vcvt.s32.f32 %v163_v9  ;;  %v164_v13 = vcvt.s32.f32 %v162_v11 }
  0xd5   : > { %166 = vmin.xlane.f32.xlu0 %v165_v10 }
 0x162   : > { %v167_v12 = vpop.xlane.xlu0 %166 }
 0x163   : > { %vm168_vm4 = vcmp.eq.f32.partialorder %v165_v10, %v167_v12  ;;  %v173_v15 = vcvt.f32.s32 %v167_v12 }
 0x164   : > { %v169_v14 = vsel %vm168_vm4, %v164_v13, inf }
 0x165   : > { %170 = vmin.xlane.f32.xlu1 %v169_v14  ;;  %v174_v17 = vshll.u32 %v173_v15, 16 }
 0x1f2   : > { %v171_v16 = vpop.xlane.xlu1 %170 }
 0x1f3   : > { %v172_v18 = vcvt.f32.s32 %v171_v16 }
 0x1f4   : > { %190 = sbr.rel (%p283_p7) target bundleno = 515 (0x203), region = 36 }
 0x1f5   : > { %v175_v20 = vadd.s32 %v174_v17, %v172_v18 }
 0x1f7   : > { %v183_v22 = vadd.s32 %v182_v19, %v175_v20 }
 0x1f9   : > { %v185_v23 = vsel %vm177_vm3, %v183_v22, %v184_v21 }
 0x1fa   : > { %186 = vst.msk [vmem:[#allocation3] sm:$0xff] %vm179_vm1, %v185_v23 }
 0x201   : > { %v191_v24 = vld [vmem:[#allocation3] sm:$0xff] }
 0x202   : > { %192 = vst.msk [vmem:[%s596_s6] sm:$0xff] %vm179_vm1, %v191_v24 }
 0x203 PF: > { %s14_s13 = sadd.s32 1, %s455_s13   ;;  %s638_s6 = smov %s431_s7 }
 0x204   : > { %p11_p12 = scmp.ge.s32.totalorder %s14_s13, 6   ;;  %s639_s7 = smov %s435_s8 }
 0x205   : > { %s640_s8 = smov %s537_s26  ;;  %s641_s9 = smov %s447_s11 }
 0x206   : > { %s642_s10 = smov %s451_s12  ;;  %s643_s11 = smov %s646_s15 }
 0x207   : > { %s644_s12 = smov %s650_s16  ;;  %13 = sbr.rel (!%p11_p12) target bundleno = 5 (0x5), region = 72 }
 0x20e   :  { %212 = vsyncpa [#allocation5], 1 }
 0x20f   :  { %214 = vsyncpa [#allocation5 + $0x1], 1 }

</bundles_post_ra>
